<compile_context>
chip_gen: v5e
topology: v5e:2x2
jax: 0.10.0
libtpu: 0.0.40
codegen_flags: <defaults>
</compile_context>

<pallas_src>
import functools

import jax
import jax.numpy as jnp
from jax.experimental import pallas as pl
from jax.experimental.pallas import tpu as pltpu


def sse_kernel(x_ref, w_ref, t_ref, out_ref, *, C, HW, multiply):
    """One grid step = a block of batch rows.

    x_ref  : (nb, C*HW) input block, native dtype (VMEM)
    w_ref  : (C,)  f32  conv weight with BN scale folded in (SMEM)
    t_ref  : (1,)  f32  folded conv bias + BN shift          (SMEM)
    out_ref: (nb, C*HW) if multiply else (nb, HW), native dtype
    """
    t = t_ref[0]

    # 1x1 conv (C -> 1) + eval-mode BN, unrolled over the tiny channel count:
    #   y[n, s] = sum_c w[c] * x[n, c*HW + s] + t        (math in f32)
    acc = None
    for c in range(C):
        xc = x_ref[:, c * HW:(c + 1) * HW].astype(jnp.float32)
        term = w_ref[c] * xc
        acc = term if acc is None else acc + term
    y = acc + t

    att = pl.reciprocal(1.0 + jnp.exp(-y), approx=False)       # sigmoid (EUP exp)

    if multiply:
        for c in range(C):
            xc = x_ref[:, c * HW:(c + 1) * HW].astype(jnp.float32)
            out_ref[:, c * HW:(c + 1) * HW] = (xc * att).astype(out_ref.dtype)
    else:
        out_ref[...] = att.astype(out_ref.dtype)


def _vmem_caps():
    """(per-step block budget, scoped vmem limit) sized to the chip generation."""
    try:
        vmem_phys = getattr(pltpu.get_tpu_info(), "vmem_capacity_bytes",
                            128 * 1024 * 1024)
    except Exception:
        vmem_phys = 128 * 1024 * 1024
    if vmem_phys <= 64 * 1024 * 1024:
        # v7x-class part: 64 MiB physical per core -> keep blocks modest.
        return 12 * 1024 * 1024, 32 * 1024 * 1024
    # v5e/v6e: 128 MiB physical, single TC -> biggest block that fits.
    return 24 * 1024 * 1024, 64 * 1024 * 1024


def _choose_block_batch(N, row_in_bytes, row_out_bytes, budget):
    """Rows per grid step.  Accounts for double buffering of in + out blocks."""
    per_row = 2 * (row_in_bytes + row_out_bytes)
    cap = max(1, budget // max(per_row, 1))
    if N <= cap:
        return N                        # single step; no per-step overhead
    nb = max(8, (cap // 8) * 8)         # sublane-aligned; partial last block OK
    return min(nb, N)


def sse_forward(x, params, *, multiply=True, eps=1e-5):
    """x: (N, C, H, W).  params = (conv_w (1,C,1,1), conv_b (1,),
    bn_gamma (1,), bn_beta (1,), bn_mean (1,), bn_var (1,)).
    Returns x * att (N,C,H,W) if multiply else att (N,1,H,W), in x.dtype."""
    w, b, gamma, beta, mean, var = params
    N, C, H, W = x.shape
    HW = H * W
    in_dtype = x.dtype

    # Fold eval-mode BatchNorm into the 1x1 conv (parameter-only folding).
    s = gamma.reshape(()).astype(jnp.float32) * jax.lax.rsqrt(
        var.reshape(()).astype(jnp.float32) + eps)
    w_eff = (w.reshape(C).astype(jnp.float32) * s)                       # (C,)
    t_eff = ((b.reshape(()).astype(jnp.float32)
              - mean.reshape(()).astype(jnp.float32)) * s
             + beta.reshape(()).astype(jnp.float32)).reshape(1)          # (1,)

    # Lane/sublane-dense layout, native dtype (no wrapper cast -> no extra HBM pass).
    x_flat = x.reshape(N, C * HW)

    itemsize = jnp.dtype(in_dtype).itemsize
    out_cols = C * HW if multiply else HW
    budget, vmem_limit = _vmem_caps()
    nb = _choose_block_batch(N, C * HW * itemsize, out_cols * itemsize, budget)
    grid = pl.cdiv(N, nb)

    kernel = functools.partial(sse_kernel, C=C, HW=HW, multiply=multiply)

    out_flat = pl.pallas_call(
        kernel,
        out_shape=jax.ShapeDtypeStruct((N, out_cols), in_dtype),
        grid_spec=pltpu.PrefetchScalarGridSpec(
            num_scalar_prefetch=0,
            grid=(grid,),
            in_specs=[
                pl.BlockSpec((nb, C * HW), lambda n: (n, 0)),            # x block
                pl.BlockSpec(memory_space=pltpu.MemorySpace.SMEM),       # w_eff (C,)
                pl.BlockSpec(memory_space=pltpu.MemorySpace.SMEM),       # t_eff (1,)
            ],
            out_specs=pl.BlockSpec((nb, out_cols), lambda n: (n, 0)),
        ),
        compiler_params=pltpu.CompilerParams(
            dimension_semantics=("parallel",),
            vmem_limit_bytes=vmem_limit,
        ),
    )(x_flat, w_eff, t_eff)

    if multiply:
        return out_flat.reshape(N, C, H, W)
    return out_flat.reshape(N, 1, H, W)


def sse_reference(x, params, *, multiply=True, eps=1e-5):
    """Pure-JAX reference mirroring the PyTorch forward (eval-mode BN), f32 math."""
    w, b, gamma, beta, mean, var = params
    N, C, H, W = x.shape
    xf = x.astype(jnp.float32)
    y = jnp.einsum("nchw,c->nhw", xf, w.reshape(C)) + b.reshape(())
    y = (y - mean.reshape(())) * (gamma.reshape(()) / jnp.sqrt(var.reshape(()) + eps)) \
        + beta.reshape(())
    y = jax.nn.sigmoid(y)[:, None, :, :]                                 # (N,1,H,W)
    return xf * y if multiply else y


if __name__ == "__main__":
    N, C, H, W = 2, 4, 16, 16

    key = jax.random.PRNGKey(0)
    kx, kw, kb, kg, kbe, km, kv = jax.random.split(key, 7)

    x = jax.random.normal(kx, (N, C, H, W), jnp.float32)
    conv_w = 0.5 * jax.random.normal(kw, (1, C, 1, 1), jnp.float32)      # Conv2d(C,1,1)
    conv_b = 0.1 * jax.random.normal(kb, (1,), jnp.float32)
    bn_gamma = 1.0 + 0.1 * jax.random.normal(kg, (1,), jnp.float32)
    bn_beta = 0.1 * jax.random.normal(kbe, (1,), jnp.float32)
    bn_mean = 0.1 * jax.random.normal(km, (1,), jnp.float32)
    bn_var = 1.0 + 0.1 * jnp.abs(jax.random.normal(kv, (1,), jnp.float32))
    params = (conv_w, conv_b, bn_gamma, bn_beta, bn_mean, bn_var)

    # f32 input, multiply=True: returns x * attention, same dtype as x.
    ret = jax.block_until_ready(sse_forward(x, params, multiply=True))
    ret_ref = sse_reference(x, params, multiply=True)
    assert ret.shape == (N, C, H, W) and ret.dtype == x.dtype
    assert jnp.allclose(ret, ret_ref, atol=1e-4, rtol=1e-4), "ret mismatch"

    # f32 input, multiply=False: returns the attention map itself.
    att = jax.block_until_ready(sse_forward(x, params, multiply=False))
    att_ref = sse_reference(x, params, multiply=False)
    assert att.shape == (N, 1, H, W) and att.dtype == x.dtype
    assert jnp.allclose(att, att_ref, atol=1e-4, rtol=1e-4), "att mismatch"

    # bf16 input: native-dtype DMA in/out, f32 math inside the kernel.
    x_bf = x.astype(jnp.bfloat16)
    ret_bf = jax.block_until_ready(sse_forward(x_bf, params, multiply=True))
    assert ret_bf.shape == (N, C, H, W) and ret_bf.dtype == jnp.bfloat16
    ret_bf_ref = sse_reference(x_bf, params, multiply=True)
    assert jnp.allclose(ret_bf.astype(jnp.float32), ret_bf_ref,
                        atol=3e-2, rtol=3e-2), "bf16 ret mismatch"

    print("KERNEL_OK")
</pallas_src>

<mosaic_0001>
module attributes {stable_mosaic.version = 11 : i64} {
  func.func @sse_kernel(%arg0: i32, %arg1: memref<2x1024xf32, #tpu.memory_space<vmem>>, %arg2: memref<4xf32, #tpu.memory_space<smem>>, %arg3: memref<1xf32, #tpu.memory_space<smem>>, %arg4: memref<2x1024xf32, #tpu.memory_space<vmem>>) attributes {dimension_semantics = [#tpu.dimension_semantics<parallel>], iteration_bounds = array<i64: 1>, scalar_prefetch = 0 : i64, scratch_operands = 0 : i64, tpu.core_type = #tpu.core_type<tc>, window_params = [{transform_indices = @transform_0, window_bounds = array<i64: 2, 1024>}, {transform_indices = @transform_1, window_bounds = array<i64: 4>}, {transform_indices = @transform_2, window_bounds = array<i64: 1>}, {transform_indices = @transform_3, window_bounds = array<i64: 2, 1024>}]} {
    %c0 = arith.constant 0 : index
    %0 = memref.load %arg3[%c0] : memref<1xf32, #tpu.memory_space<smem>>
    %c0_0 = arith.constant 0 : index
    %c0_1 = arith.constant 0 : index
    %1 = vector.load %arg1[%c0_0, %c0_1] : memref<2x1024xf32, #tpu.memory_space<vmem>>, vector<2x256xf32>
    %c0_2 = arith.constant 0 : index
    %2 = memref.load %arg2[%c0_2] : memref<4xf32, #tpu.memory_space<smem>>
    %3 = vector.broadcast %2 : f32 to vector<2x256xf32>
    %4 = arith.mulf %3, %1 : vector<2x256xf32>
    %c0_3 = arith.constant 0 : index
    %c256 = arith.constant 256 : index
    %5 = vector.load %arg1[%c0_3, %c256] : memref<2x1024xf32, #tpu.memory_space<vmem>>, vector<2x256xf32>
    %c1 = arith.constant 1 : index
    %6 = memref.load %arg2[%c1] : memref<4xf32, #tpu.memory_space<smem>>
    %7 = vector.broadcast %6 : f32 to vector<2x256xf32>
    %8 = arith.mulf %7, %5 : vector<2x256xf32>
    %9 = arith.addf %4, %8 : vector<2x256xf32>
    %c0_4 = arith.constant 0 : index
    %c512 = arith.constant 512 : index
    %10 = vector.load %arg1[%c0_4, %c512] : memref<2x1024xf32, #tpu.memory_space<vmem>>, vector<2x256xf32>
    %c2 = arith.constant 2 : index
    %11 = memref.load %arg2[%c2] : memref<4xf32, #tpu.memory_space<smem>>
    %12 = vector.broadcast %11 : f32 to vector<2x256xf32>
    %13 = arith.mulf %12, %10 : vector<2x256xf32>
    %14 = arith.addf %9, %13 : vector<2x256xf32>
    %c0_5 = arith.constant 0 : index
    %c768 = arith.constant 768 : index
    %15 = vector.load %arg1[%c0_5, %c768] : memref<2x1024xf32, #tpu.memory_space<vmem>>, vector<2x256xf32>
    %c3 = arith.constant 3 : index
    %16 = memref.load %arg2[%c3] : memref<4xf32, #tpu.memory_space<smem>>
    %17 = vector.broadcast %16 : f32 to vector<2x256xf32>
    %18 = arith.mulf %17, %15 : vector<2x256xf32>
    %19 = arith.addf %14, %18 : vector<2x256xf32>
    %20 = vector.broadcast %0 : f32 to vector<2x256xf32>
    %21 = arith.addf %19, %20 : vector<2x256xf32>
    %cst = arith.constant 0.000000e+00 : f32
    %22 = vector.broadcast %cst : f32 to vector<2x256xf32>
    %23 = arith.subf %22, %21 : vector<2x256xf32>
    %24 = math.exp %23 : vector<2x256xf32>
    %cst_6 = arith.constant 1.000000e+00 : f32
    %25 = vector.broadcast %cst_6 : f32 to vector<2x256xf32>
    %26 = arith.addf %25, %24 : vector<2x256xf32>
    %27 = tpu.reciprocal %26 : vector<2x256xf32> -> vector<2x256xf32>
    %c0_7 = arith.constant 0 : index
    %c0_8 = arith.constant 0 : index
    %28 = vector.load %arg1[%c0_7, %c0_8] : memref<2x1024xf32, #tpu.memory_space<vmem>>, vector<2x256xf32>
    %29 = arith.mulf %28, %27 : vector<2x256xf32>
    %c0_9 = arith.constant 0 : index
    %c0_10 = arith.constant 0 : index
    %30 = vector.load %arg4[%c0_9, %c0_10] : memref<2x1024xf32, #tpu.memory_space<vmem>>, vector<2x256xf32>
    tpu.vector_store %arg4[%c0_9, %c0_10], %29 {strides = array<i32>} : memref<2x1024xf32, #tpu.memory_space<vmem>>, vector<2x256xf32>,
    %c0_11 = arith.constant 0 : index
    %c256_12 = arith.constant 256 : index
    %31 = vector.load %arg1[%c0_11, %c256_12] : memref<2x1024xf32, #tpu.memory_space<vmem>>, vector<2x256xf32>
    %32 = arith.mulf %31, %27 : vector<2x256xf32>
    %c0_13 = arith.constant 0 : index
    %c256_14 = arith.constant 256 : index
    %33 = vector.load %arg4[%c0_13, %c256_14] : memref<2x1024xf32, #tpu.memory_space<vmem>>, vector<2x256xf32>
    tpu.vector_store %arg4[%c0_13, %c256_14], %32 {strides = array<i32>} : memref<2x1024xf32, #tpu.memory_space<vmem>>, vector<2x256xf32>,
    %c0_15 = arith.constant 0 : index
    %c512_16 = arith.constant 512 : index
    %34 = vector.load %arg1[%c0_15, %c512_16] : memref<2x1024xf32, #tpu.memory_space<vmem>>, vector<2x256xf32>
    %35 = arith.mulf %34, %27 : vector<2x256xf32>
    %c0_17 = arith.constant 0 : index
    %c512_18 = arith.constant 512 : index
    %36 = vector.load %arg4[%c0_17, %c512_18] : memref<2x1024xf32, #tpu.memory_space<vmem>>, vector<2x256xf32>
    tpu.vector_store %arg4[%c0_17, %c512_18], %35 {strides = array<i32>} : memref<2x1024xf32, #tpu.memory_space<vmem>>, vector<2x256xf32>,
    %c0_19 = arith.constant 0 : index
    %c768_20 = arith.constant 768 : index
    %37 = vector.load %arg1[%c0_19, %c768_20] : memref<2x1024xf32, #tpu.memory_space<vmem>>, vector<2x256xf32>
    %38 = arith.mulf %37, %27 : vector<2x256xf32>
    %c0_21 = arith.constant 0 : index
    %c768_22 = arith.constant 768 : index
    %39 = vector.load %arg4[%c0_21, %c768_22] : memref<2x1024xf32, #tpu.memory_space<vmem>>, vector<2x256xf32>
    tpu.vector_store %arg4[%c0_21, %c768_22], %38 {strides = array<i32>} : memref<2x1024xf32, #tpu.memory_space<vmem>>, vector<2x256xf32>,
    return
  }
  func.func @transform_0(%arg0: i32) -> (i32, i32) {
    %c0_i32 = arith.constant 0 : i32
    %c0_i32_0 = arith.constant 0 : i32
    return %arg0, %c0_i32 : i32, i32
  }
  func.func @transform_1(%arg0: i32) -> i32 {
    %c0_i32 = arith.constant 0 : i32
    %c0_i32_0 = arith.constant 0 : i32
    return %c0_i32 : i32
  }
  func.func @transform_2(%arg0: i32) -> i32 {
    %c0_i32 = arith.constant 0 : i32
    %c0_i32_0 = arith.constant 0 : i32
    return %c0_i32 : i32
  }
  func.func @transform_3(%arg0: i32) -> (i32, i32) {
    %c0_i32 = arith.constant 0 : i32
    %c0_i32_0 = arith.constant 0 : i32
    return %arg0, %c0_i32 : i32, i32
  }
}

</mosaic_0001>

<bundles_post_ra>
// kernel: tpu_custom_call.1
= control target key start
LH: loop header
LB: loop body
LE: loop exit
PB: predicated region body
PF: predicated region fallthrough
CT: control target
= control target key end

     0   :  { %9 = vsyncpa [#allocation4], 0  ;;  %s223_s0 = inlined_call_operand.hbm [shape: f32[2,1024], index: 0, kind: input, shape index: {}]   ;;  %s224_s1 = inlined_call_operand.vmem [shape: f32[4], index: 1, kind: input, shape index: {}]   ;;  %s225_s2 = inlined_call_operand.<no memory space> [shape: f32[1], index: 2, kind: input, shape index: {}]   ;;  %s226_s3 = inlined_call_operand.hbm [shape: f32[2,1024], index: 3, kind: output, shape index: {}]  }
   0x1   :  { %10 = vsyncpa [#allocation6], 0 }
   0x2   :  { %11 = vsyncpa [#allocation5], 0  ;;  %s17_s14 = sshll.u32 %s223_s0, 4  ;;  %s188_s15 = smov [#allocation3]   ;;  %s18_s14 = int_to_ptr.hbm [resolvable:$true] %s17_s14 }
   0x3   :  { %s19_s16 = sshll.u32 %s188_s15, 4  ;;  %s28_s19 = sshll.u32 %s224_s1, 4  ;;  %s20_s16 = int_to_ptr.vmem [resolvable:$true] %s19_s16  ;;  %s29_s19 = int_to_ptr.vmem [resolvable:$true] %s28_s19 }
   0x4   :  { %22 = dma.hbm_to_vmem [thread:$0]  %s18_s14, 256, %s20_s16, [#allocation4]  }
   0x5   :  { %s189_s20 = smov [#allocation7]  }
   0x6   :  { %31 = dma.vmem_to_smem %s29_s19, 16, %s189_s20, [#allocation6]  }
   0x7   :  { %182 = dma.done.wait [#allocation4], 256  }
   0x8   :  { %183 = vsyncadd [#allocation4], 4294967040 }
   0x9   :  { %184 = dma.done.wait [#allocation6], 16  }
   0xa   :  { %185 = vsyncadd [#allocation6], 4294967280 }
   0xb   :  { %42 = sfence }
   0xc   :  { %s45_s21 = sld [smem:[#allocation7]]  ;;  %v44_v0 = vld [vmem:[#allocation3] sm:$0xf]  ;;  %v48_v1 = vld [vmem:[#allocation3 + $0x4] sm:$0xf]  ;;  %v63_v14 = vstv %s225_s2  ;;  %s190_s2 = smov [#allocation8]  }
   0xd   :  { %s112_s22 = sld [smem:[#allocation7 + $0x1]]  ;;  %v53_v3 = vld [vmem:[#allocation3 + $0x8] sm:$0xf]  ;;  %v58_v6 = vld [vmem:[#allocation3 + $0xc] sm:$0xf]  ;;  %s99_s25 = sshll.u32 %s190_s2, 4  ;;  %s100_s25 = int_to_ptr.vmem [resolvable:$true] %s99_s25 }
   0xe   :  { %s113_s0 = sld [smem:[#allocation7 + $0x2]]  ;;  %v85_v29 = vld [vmem:[#allocation3 + $0x4] sm:$0xf]  ;;  %v88_v30 = vld [vmem:[#allocation3 + $0x8] sm:$0xf]  ;;  %s101_s28 = sshll.u32 %s226_s3, 4  ;;  %s102_s28 = int_to_ptr.hbm [resolvable:$true] %s101_s28 }
   0xf   :  { %s114_s23 = sld [smem:[#allocation7 + $0x3]]  ;;  %v91_v32 = vld [vmem:[#allocation3 + $0xc] sm:$0xf] }
  0x12   :  { %v46_v2 = vstv %s45_s21 }
  0x13   :  { %v47_v4 = vmul.f32 %v46_v2, %v44_v0  ;;  %v50_v5 = vstv %s112_s22 }
  0x14   :  { %v51_v7 = vmul.f32 %v50_v5, %v48_v1  ;;  %v55_v8 = vstv %s113_s0 }
  0x15   :  { %v56_v9 = vmul.f32 %v55_v8, %v53_v3  ;;  %v60_v10 = vstv %s114_s23 }
  0x16   :  { %v52_v11 = vadd.f32 %v51_v7, %v47_v4  ;;  %v61_v12 = vmul.f32 %v60_v10, %v58_v6 }
  0x18   :  { %v57_v13 = vadd.f32 %v56_v9, %v52_v11 }
  0x1a   :  { %v62_v15 = vadd.f32 %v61_v12, %v57_v13 }
  0x1c   :  { %v64_v16 = vadd.f32 %v63_v14, %v62_v15 }
  0x1e   :  { %v65_v17 = vsub.f32 0.0, %v64_v16 }
  0x20   :  { %v66_v18 = vmul.f32 1.442695, %v65_v17 }
  0x22   :  { %118 = vpow2.f32 %v66_v18 }
  0x28   :  { %v119_v19 = vpop.eup %118 }
  0x29   :  { %v68_v20 = vadd.f32 1.0, %v119_v19 }
  0x2b   :  { %120 = vrcp.f32 %v68_v20  ;;  %v80_v23 = vand.u32 2147483648, %v68_v20  ;;  %vm74_vm0 = vweird.f32 %v68_v20  ;;  %v78_v25 = vand.u32 2147483647, %v68_v20 }
  0x2d   :  { %v81_v27 = vor.u32 1.1754944e-38, %v80_v23  ;;  %vm79_vm3 = vcmp.eq.f32.partialorder %v78_v25, 8.507059e+37 }
  0x31   :  { %v121_v21 = vpop.eup %120 }
  0x32   :  { %v70_v22 = vmul.f32 %v121_v21, %v68_v20  ;;  %vm75_vm1 = vweird.f32 %v121_v21 }
  0x33   :  { %vm76_vm2 = vmor %vm74_vm0, %vm75_vm1 }
  0x34   :  { %v71_v24 = vsub.f32 1.0, %v70_v22 }
  0x36   :  { %v72_v26 = vmul.f32 %v121_v21, %v71_v24 }
  0x38   :  { %v73_v28 = vadd.f32 %v121_v21, %v72_v26 }
  0x3a   :  { %v77_v31 = vsel %vm76_vm2, %v121_v21, %v73_v28 }
  0x3b   :  { %v82_v33 = vsel %vm79_vm3, %v81_v27, %v77_v31 }
  0x3c   :  { %v83_v34 = vmul.f32 %v82_v33, %v44_v0  ;;  %v86_v35 = vmul.f32 %v85_v29, %v82_v33  ;;  %v89_v36 = vmul.f32 %v88_v30, %v82_v33  ;;  %v92_v37 = vmul.f32 %v91_v32, %v82_v33 }
  0x3e   :  { %84 = vst [vmem:[#allocation8] sm:$0xf] %v83_v34 }
  0x3f   :  { %87 = vst [vmem:[#allocation8 + $0x4] sm:$0xf] %v86_v35 }
  0x40   :  { %90 = vst [vmem:[#allocation8 + $0x8] sm:$0xf] %v89_v36 }
  0x41   :  { %93 = vst [vmem:[#allocation8 + $0xc] sm:$0xf] %v92_v37 }
  0x42   :  { %104 = dma.vmem_to_hbm [thread:$0]  %s100_s25, 256, %s102_s28, [#allocation5]  }
  0x43   :  { %186 = dma.done.wait [#allocation5], 256  }
  0x44   :  { %187 = vsyncadd [#allocation5], 4294967040 }
  0x45   :  { %109 = vsyncpa [#allocation4], 1 }
  0x46   :  { %110 = vsyncpa [#allocation5], 1 }
  0x47   :  { %111 = vsyncpa [#allocation6], 1 }

</bundles_post_ra>
